<compile_context>
chip_gen: v7x
topology: tpu7x:2x2x1
jax: 0.10.0
libtpu: 0.0.40
codegen_flags: <defaults>
</compile_context>

<pallas_src>
import math
from functools import partial

import jax
import jax.numpy as jnp
from jax.experimental import pallas as pl
from jax.experimental.pallas import tpu as pltpu


def _round_up(x: int, m: int) -> int:
    return ((x + m - 1) // m) * m


def _sublane_multiple(dtype) -> int:
    # f32 -> 8, bf16 -> 16, int8/fp8 -> 32 (sub-32-bit types pack sublanes).
    itemsize = jnp.dtype(dtype).itemsize
    return max(8, 32 // max(itemsize, 1))


def _real_gabor_kernel(x_ref, w_ref, b_ref, o_ref, *, n_pad: int, use_sin: bool):
    # x_ref: (tm, K) streamed rows.  w_ref: (K, 2*n_pad) = [w0*Wf | s0*Ws]
    # (resident, single-buffered).  b_ref: (1, 2*n_pad) = [w0*bf | s0*bs].
    x = x_ref[...]
    # Single fused projection, f32 accumulation on the MXU.
    z = jnp.dot(x, w_ref[...], preferred_element_type=jnp.float32)
    z = z + b_ref[...].astype(jnp.float32)
    # Static split at a 128-aligned lane boundary.
    zf = z[:, :n_pad]
    zs = z[:, n_pad:]
    freq = jnp.sin(zf) if use_sin else jnp.cos(zf)
    o_ref[...] = (freq * jnp.exp(-(zs * zs))).astype(o_ref.dtype)


def real_gabor_layer(x, w_freqs, b_freqs, w_scale, b_scale, w0, s0,
                     *, freqs_act: str = "sin", row_tile: int = 32768):
    """Fused RealGaborLayer forward.

    x:        (..., in_features)
    w_freqs:  (in_features, out_features)   (== torch freqs.weight.T)
    b_freqs:  (out_features,) or None
    w_scale:  (in_features, out_features)   (== torch scale.weight.T)
    b_scale:  (out_features,) or None
    w0, s0:   scalars
    """
    assert freqs_act in ("sin", "cos")
    K = x.shape[-1]
    N = w_freqs.shape[-1]
    assert w_freqs.shape == (K, N) and w_scale.shape == (K, N)

    lead = x.shape[:-1]
    M = math.prod(lead) if lead else 1
    x2 = x.reshape(M, K)

    f32 = jnp.float32
    n_pad = _round_up(N, 128)          # lane-dense output width

    def pad_cols(a, width):
        if a.shape[-1] == width:
            return a
        return jnp.pad(a, ((0, 0), (0, width - a.shape[-1])))

    # Fold w0/s0 into the (tiny) weights/biases; pad columns to n_pad; fuse
    # both projections into one resident operand.
    wf = pad_cols(jnp.asarray(w0, w_freqs.dtype) * w_freqs, n_pad)
    ws = pad_cols(jnp.asarray(s0, w_scale.dtype) * w_scale, n_pad)
    w_cat = jnp.concatenate([wf, ws], axis=1)                 # (K, 2*n_pad)

    bf = jnp.zeros((N,), f32) if b_freqs is None else b_freqs.astype(f32)
    bs = jnp.zeros((N,), f32) if b_scale is None else b_scale.astype(f32)
    bf = pad_cols((jnp.asarray(w0, f32) * bf).reshape(1, N), n_pad)
    bs = pad_cols((jnp.asarray(s0, f32) * bs).reshape(1, N), n_pad)
    b_cat = jnp.concatenate([bf, bs], axis=1)                 # (1, 2*n_pad) f32

    # --- Layout-aware row-tile / VMEM sizing -------------------------------
    out_dtype = x.dtype
    sub = _sublane_multiple(x.dtype)
    x_item = jnp.dtype(x.dtype).itemsize
    out_item = jnp.dtype(out_dtype).itemsize
    w_item = jnp.dtype(w_cat.dtype).itemsize
    k_pad = _round_up(K, 128)          # x lane-pads K up to 128

    # Resident (single-buffered) weight + bias footprint, sublane-padded.
    w_bytes = _round_up(K, _sublane_multiple(w_cat.dtype)) * (2 * n_pad) * w_item
    b_bytes = 8 * (2 * n_pad) * 4
    resident = w_bytes + b_bytes

    # Target total VMEM ~44 MiB: safe under v7x's 64 MiB physical VMEM and
    # well under v5e/v6e's 128 MiB; the explicit vmem_limit_bytes below lifts
    # us past the 16/32 MiB scoped defaults.
    target_total = 44 * 1024 * 1024
    streamed_budget = max(4 * 1024 * 1024, target_total - resident)
    # Streamed x/out blocks are double-buffered; use lane-padded widths.
    bytes_per_row = 2 * (k_pad * x_item + n_pad * out_item)
    budget_tm = max(sub, streamed_budget // max(bytes_per_row, 1))

    tm_half = _round_up(pl.cdiv(M, 2), sub)   # keep grid_m >= 2 for megacore
    tm = max(sub, min(row_tile, budget_tm, tm_half))
    tm = (tm // sub) * sub
    if tm >= M:
        tm = M            # single full-extent block (always layout-legal)
        grid_m = 1
    else:
        grid_m = pl.cdiv(M, tm)   # partial last block masked by Pallas

    total_vmem = 2 * tm * (k_pad * x_item + n_pad * out_item) + resident
    vmem_limit = int(min(max(total_vmem * 1.3, 16 * 1024 * 1024),
                         56 * 1024 * 1024))

    out2 = pl.pallas_call(
        partial(_real_gabor_kernel, n_pad=n_pad, use_sin=(freqs_act == "sin")),
        out_shape=jax.ShapeDtypeStruct((M, n_pad), out_dtype),
        grid_spec=pltpu.PrefetchScalarGridSpec(
            num_scalar_prefetch=0,
            grid=(grid_m,),
            in_specs=[
                pl.BlockSpec((tm, K), lambda i: (i, 0)),       # x rows (streamed)
                pl.BlockSpec((K, 2 * n_pad), lambda i: (0, 0),
                             pipeline_mode=pl.Buffered(1)),    # fused weights (resident)
                pl.BlockSpec((1, 2 * n_pad), lambda i: (0, 0),
                             pipeline_mode=pl.Buffered(1)),    # fused biases (resident)
            ],
            out_specs=pl.BlockSpec((tm, n_pad), lambda i: (i, 0)),
        ),
        compiler_params=pltpu.CompilerParams(
            dimension_semantics=("parallel",),
            vmem_limit_bytes=vmem_limit),
    )(x2, w_cat, b_cat)

    if n_pad != N:
        out2 = out2[:, :N]
    return out2.reshape(*lead, N)


if __name__ == "__main__":
    key = jax.random.PRNGKey(0)
    kx, kwf, kbf, kws, kbs = jax.random.split(key, 5)

    batch, seq, in_features, out_features = 2, 8, 32, 32
    w0, s0 = 10.0, 4.0

    x = jax.random.normal(kx, (batch, seq, in_features), dtype=jnp.float32)

    # Deterministic WIRE-style init (is_first: uniform(-1/in, 1/in)); weights
    # are stored already transposed to (in_features, out_features).
    w_std = 1.0 / in_features
    w_freqs = jax.random.uniform(kwf, (in_features, out_features),
                                 jnp.float32, -w_std, w_std)
    w_scale = jax.random.uniform(kws, (in_features, out_features),
                                 jnp.float32, -w_std, w_std)
    b_freqs = jax.random.uniform(kbf, (out_features,), jnp.float32, -w_std, w_std)
    b_scale = jax.random.uniform(kbs, (out_features,), jnp.float32, -w_std, w_std)

    y = real_gabor_layer(x, w_freqs, b_freqs, w_scale, b_scale, w0, s0,
                         freqs_act="sin")
    y = jax.block_until_ready(y)

    # Pure-JAX reference.
    zf = x @ w_freqs + b_freqs
    zs = x @ w_scale + b_scale
    y_ref = jnp.sin(w0 * zf) * jnp.exp(-(s0 * zs) ** 2)

    assert y.shape == y_ref.shape and y.dtype == x.dtype
    max_err = float(jnp.max(jnp.abs(y - y_ref)))
    assert jnp.allclose(y, y_ref, atol=2e-3, rtol=2e-3), max_err

    print("KERNEL_OK")
</pallas_src>

<mosaic_0001>
module attributes {stable_mosaic.version = 11 : i64} {
  func.func @_real_gabor_kernel(%arg0: i32, %arg1: memref<8x32xf32, #tpu.memory_space<vmem>>, %arg2: memref<32x256xf32, #tpu.memory_space<vmem>>, %arg3: memref<1x256xf32, #tpu.memory_space<vmem>>, %arg4: memref<8x128xf32, #tpu.memory_space<vmem>>) attributes {dimension_semantics = [#tpu.dimension_semantics<parallel>], iteration_bounds = array<i64: 2>, scalar_prefetch = 0 : i64, scratch_operands = 0 : i64, tpu.core_type = #tpu.core_type<tc>, window_params = [{transform_indices = @transform_0, window_bounds = array<i64: 8, 32>}, {pipeline_mode = #tpu.pipeline_mode<synchronous>, transform_indices = @transform_1, window_bounds = array<i64: 32, 256>}, {pipeline_mode = #tpu.pipeline_mode<synchronous>, transform_indices = @transform_2, window_bounds = array<i64: 1, 256>}, {transform_indices = @transform_3, window_bounds = array<i64: 8, 128>}]} {
    %c0 = arith.constant 0 : index
    %c0_0 = arith.constant 0 : index
    %0 = vector.load %arg1[%c0, %c0_0] : memref<8x32xf32, #tpu.memory_space<vmem>>, vector<8x32xf32>
    %c0_1 = arith.constant 0 : index
    %c0_2 = arith.constant 0 : index
    %1 = vector.load %arg2[%c0_1, %c0_2] : memref<32x256xf32, #tpu.memory_space<vmem>>, vector<32x256xf32>
    %cst = arith.constant dense<0.000000e+00> : vector<8x256xf32>
    %2 = tpu.matmul %0, %1, %cst {dimension_numbers = #tpu.dot_dimension_numbers<[1], [0], [0], [1], [0, 0, 1, 1], [], []>} : vector<8x32xf32>, vector<32x256xf32>, vector<8x256xf32> -> vector<8x256xf32>
    %c0_3 = arith.constant 0 : index
    %c0_4 = arith.constant 0 : index
    %3 = vector.load %arg3[%c0_3, %c0_4] : memref<1x256xf32, #tpu.memory_space<vmem>>, vector<1x256xf32>
    %4 = vector.broadcast %3 : vector<1x256xf32> to vector<8x256xf32>
    %5 = arith.addf %2, %4 : vector<8x256xf32>
    %6 = vector.extract_strided_slice %5 {offsets = [0, 0], sizes = [8, 128], strides = [1, 1]} : vector<8x256xf32> to vector<8x128xf32>
    %7 = vector.extract_strided_slice %5 {offsets = [0, 128], sizes = [8, 128], strides = [1, 1]} : vector<8x256xf32> to vector<8x128xf32>
    %8 = math.sin %6 : vector<8x128xf32>
    %9 = arith.mulf %7, %7 : vector<8x128xf32>
    %cst_5 = arith.constant 0.000000e+00 : f32
    %10 = vector.broadcast %cst_5 : f32 to vector<8x128xf32>
    %11 = arith.subf %10, %9 : vector<8x128xf32>
    %12 = math.exp %11 : vector<8x128xf32>
    %13 = arith.mulf %8, %12 : vector<8x128xf32>
    %c0_6 = arith.constant 0 : index
    %c0_7 = arith.constant 0 : index
    %14 = vector.load %arg4[%c0_6, %c0_7] : memref<8x128xf32, #tpu.memory_space<vmem>>, vector<8x128xf32>
    tpu.vector_store %arg4[%c0_6, %c0_7], %13 {strides = array<i32>} : memref<8x128xf32, #tpu.memory_space<vmem>>, vector<8x128xf32>,
    return
  }
  func.func @transform_0(%arg0: i32) -> (i32, i32) {
    %c0_i32 = arith.constant 0 : i32
    %c0_i32_0 = arith.constant 0 : i32
    return %arg0, %c0_i32 : i32, i32
  }
  func.func @transform_1(%arg0: i32) -> (i32, i32) {
    %c0_i32 = arith.constant 0 : i32
    %c0_i32_0 = arith.constant 0 : i32
    %c0_i32_1 = arith.constant 0 : i32
    return %c0_i32, %c0_i32_0 : i32, i32
  }
  func.func @transform_2(%arg0: i32) -> (i32, i32) {
    %c0_i32 = arith.constant 0 : i32
    %c0_i32_0 = arith.constant 0 : i32
    %c0_i32_1 = arith.constant 0 : i32
    return %c0_i32, %c0_i32_0 : i32, i32
  }
  func.func @transform_3(%arg0: i32) -> (i32, i32) {
    %c0_i32 = arith.constant 0 : i32
    %c0_i32_0 = arith.constant 0 : i32
    return %arg0, %c0_i32 : i32, i32
  }
}

</mosaic_0001>

<bundles_post_ra>
// kernel: tpu_custom_call.1
= control target key start
LH: loop header
LB: loop body
LE: loop exit
PB: predicated region body
PF: predicated region fallthrough
CT: control target
= control target key end

     0   :  { %8 = vsyncpa [#allocation3], 0  ;;  %s994_s0 = inlined_call_operand.hbm [shape: f32[16,32], index: 0, kind: input, shape index: {}]   ;;  %s995_s1 = inlined_call_operand.hbm [shape: f32[32,256], index: 1, kind: input, shape index: {}]   ;;  %s996_s2 = inlined_call_operand.vmem [shape: f32[1,256], index: 2, kind: input, shape index: {}]   ;;  %s997_s3 = inlined_call_operand.hbm [shape: f32[16,128], index: 3, kind: output, shape index: {}]  }
   0x1   :  { %10 = vsyncpa [#allocation3 + $0x1], 0 }
   0x2   :  { %11 = vsyncpa [#allocation6], 0 }
   0x3   :  { %12 = vsyncpa [#allocation4], 0 }
   0x4   :  { %14 = vsyncpa [#allocation4 + $0x1], 0  ;;  %s766_s12 = smov 0   ;;  %s768_s13 = smov 0  }
   0x5   :  { %s770_s14 = smov 0   ;;  %s772_s15 = smov 0  }
   0x6 LB: > { %s787_s16 = sadd.s32 4294967295, %s732_s15   ;;  %s501_s17 = sadd.s32 4294967294, %s732_s15   ;;  %s732_s15 = sphi %s772_s15, %s1017_s15   ;;  %s728_s14 = sphi %s770_s14, %s1016_s14   ;;  %s724_s13 = sphi %s768_s13, %s1015_s13   ;;  %s720_s12 = sphi %s766_s12, %s1014_s12  }
   0x7   : > { %p40_p0 = scmp.ne.s32.totalorder %s724_s13, %s720_s12  ;;  %p998_p1 = scmp.eq.s32.totalorder %s787_s16, 0 }
   0x8   : > { %p112_p3 = scmp.eq.s32.totalorder %s501_s17, 1  ;;  %p502_p5 = scmp.ge.s32.totalorder %s732_s15, 1 }
   0x9   : > { %p796_p4 = por %p998_p1, %p40_p0  ;;  %p119_p7 = scmp.lt.s32.totalorder %s732_s15, 3 }
   0xa   : > { %p801_p6 = por %p112_p3, %p40_p0  ;;  %s734_s21 = smov [#allocation5]  }
   0xb   : > { %s1001_s18 = scalar_select %p796_p4, 1, 0 }
   0xc   : > { %s1002_s19 = scalar_select %p801_p6, 1, 0 }
   0xd   : > { %p806_p8 = pnand %p502_p5, %p119_p7  ;;  %s131_s22 = sshll.u32 %s734_s21, 4  ;;  %s810_s22 = int_to_ptr.vmem [resolvable:$true] %s131_s22 }
   0xe   : > { %s822_s24 = sadd.s32 1, %s732_s15   ;;  %s27_s25 = sadd.s32 1, %s728_s14 }
   0xf   : > { %s1003_s20 = scalar_select %p806_p8, 1, 0 }
  0x10   : > { %p540_p9 = pneg %p806_p8  ;;  %s24_s26 = ssub.s32 %s732_s15, %s822_s24 }
  0x11   : > { %s604_s29 = scalar_lea.hbm %s995_s1, 1024 }
  0x12   : > { %p817_p11 = pnand %p540_p9, %p998_p1  ;;  %p605_p12 = scmp.ne.s32.totalorder %s995_s1, %s604_s29 }
  0x13   : > { %p611_p5 = scmp.lt.u32.totalorder %s604_s29, %s995_s1 }
  0x14   : > { %p606_p13 = pneg %p817_p11 }
  0x16   : > { %p607_p0 = pnand %p606_p13, %p605_p12 }
  0x18   : > { %p608_p3 = pneg %p607_p0 }
  0x1a   : > { %p613_p7 = pnand %p611_p5, %p608_p3 }
  0x1c   : > { %616 = shalt.err (!%p613_p7)
}
  0x1d   : > { %s617_s7 = scalar_lea.vmem %s810_s22, 1024  ;;  %p625_p2 = scmp.lt.s32.totalorder %s810_s22, %s810_s22 }
  0x1e   : > { %p618_p9 = scmp.ne.s32.totalorder %s810_s22, %s617_s7  ;;  %p626_p6 = scmp.lt.s32.totalorder %s617_s7, %s617_s7 }
  0x20   : > { %p620_p10 = pnand %p618_p9, %p606_p13  ;;  %p627_p4 = por %p626_p6, %p625_p2 }
  0x22   : > { %p621_p1 = pneg %p620_p10 }
  0x24   : > { %p628_p8 = pnand %p627_p4, %p621_p1 }
  0x26   : > { %631 = shalt.err (!%p628_p8)
}
  0x27   : > { %s735_s8 = smov 256   ;;  %s736_s9 = smov 16  }
  0x28   : > { %543 = dma.hbm_to_vmem [thread:$0]  (!%p817_p11), %s995_s1, 1024, %s810_s22, [#allocation6], %s735_s8, %s735_s8, %s736_s9  }
  0x29   : > { %p25_p2 = scmp.eq.s32.totalorder %s24_s26, 0  ;;  %p34_p1 = scmp.ne.s32.totalorder %s728_s14, %s724_s13 }
  0x2a   : > { %p35_p4 = scmp.eq.s32.totalorder %s732_s15, 0  ;;  %p553_p6 = scmp.lt.s32.totalorder %s732_s15, 2 }
  0x2b   : > { %s853_s17 = scalar_select %p25_p2, %s728_s14, %s27_s25  }
  0x2c   : > { %p36_p8 = por %p35_p4, %p34_p1  ;;  %p1005_p10 = scmp.eq.s32.totalorder %s787_s16, 1 }
  0x2d   : > { %s148_s27 = sand.u32 1, %s728_s14   ;;  %s506_s28 = sshll.u32 %s732_s15, 7 }
  0x2e   : > { %p857_p12 = por %p1005_p10, %p34_p1  ;;  %s505_s29 = sshll.u32 %s148_s27, 3 }
  0x2f   : > { %s866_s4 = scalar_lea.hbm %s994_s0, %s506_s28  ;;  %s152_s22 = scalar_lea.vmem [#allocation2], %s505_s29 }
  0x30   : > { %s159_s25 = sshll.u32 %s152_s22, 4  ;;  %p868_p11 = pnand %p553_p6, %p36_p8  ;;  %s872_s25 = int_to_ptr.vmem [resolvable:$true] %s159_s25 }
  0x31   : > { %s149_s5 = scalar_lea.sflag [#allocation3], %s148_s27  ;;  %s632_s6 = scalar_lea.hbm %s866_s4, 128 }
  0x32   : > { %p633_p13 = scmp.ne.s32.totalorder %s866_s4, %s632_s6  ;;  %p634_p0 = pneg %p868_p11 }
  0x33   : > { %s637_s9 = scalar_lea.hbm %s994_s0, 256  ;;  %p638_p7 = scmp.lt.u32.totalorder %s866_s4, %s994_s0 }
  0x34   : > { %p635_p3 = pnand %p634_p0, %p633_p13  ;;  %p639_p9 = scmp.lt.u32.totalorder %s637_s9, %s632_s6 }
  0x35   : > { %p641_p1 = scmp.lt.u32.totalorder %s632_s6, %s866_s4 }
  0x36   : > { %p636_p5 = pneg %p635_p3  ;;  %p640_p2 = por %p639_p9, %p638_p7 }
  0x38   : > { %p642_p4 = por %p641_p1, %p640_p2 }
  0x3a   : > { %p643_p6 = pnand %p642_p4, %p636_p5 }
  0x3c   : > { %646 = shalt.err (!%p643_p6)
}
  0x3d   : > { %s647_s27 = scalar_lea.vmem %s872_s25, 128  ;;  %s737_s28 = smov [#allocation2]  }
  0x3e   : > { %p648_p8 = scmp.ne.s32.totalorder %s872_s25, %s647_s27  ;;  %s652_s29 = sshll.u32 %s737_s28, 4  ;;  %s653_s29 = int_to_ptr.vmem [resolvable:$false] %s652_s29 }
  0x3f   : > { %s654_s23 = scalar_lea.vmem %s653_s29, 256  ;;  %p655_p3 = scmp.lt.s32.totalorder %s872_s25, %s653_s29 }
  0x40   : > { %p650_p10 = pnand %p648_p8, %p634_p0  ;;  %p656_p7 = scmp.lt.s32.totalorder %s654_s23, %s647_s27 }
  0x42   : > { %p651_p13 = pneg %p650_p10  ;;  %p657_p9 = por %p656_p7, %p655_p3 }
  0x44   : > { %p658_p2 = pnand %p657_p9, %p651_p13 }
  0x46   : > { %661 = shalt.err (!%p658_p2)
}
  0x47   : > { %547 = dma.hbm_to_vmem [thread:$0]  (!%p868_p11), %s866_s4, 128, %s872_s25, %s149_s5  }
  0x48   : > { %p1008_p5 = scmp.ne.s32.totalorder %s1003_s20, 0 }
  0x49   : > { %s902_s30 = sand.u32 (!%p1008_p5), 1, %s724_s13   ;;  %p1009_p0 = scmp.ne.s32.totalorder (!%p1008_p5), %s1001_s18, 0 }
  0x4a   : > { %168 = sbr.rel (%p1008_p5) target bundleno = 405 (0x195), region = 32  ;;  %s508_s22 = sshll.u32 (!%p1008_p5), %s902_s30, 3 }
  0x4b   : > { %s171_s6 = scalar_lea.sflag (!%p1008_p5), [#allocation3], %s902_s30  ;;  %s174_s7 = scalar_lea.vmem (!%p1008_p5), [#allocation2], %s508_s22 }
  0x51   : > { %707 = dma.done.wait (%p1009_p0), %s171_s6, 128  }
  0x52   : > { %709 = vsyncadd (%p1009_p0), %s171_s6, 4294967168  ;;  %p1010_p11 = scmp.eq.s32.totalorder %s787_s16, 0 }
  0x54   : > { %711 = dma.done.wait (%p1010_p11), [#allocation6], 1024   ;;  %p1011_p1 = pmov %p1010_p11 }
  0x55   : > { %v738_v0 = vmov 0.0   ;;  %v203_v1 = vld [vmem:[#allocation5 + $0x8] sm:$0xff]  ;;  %v205_v2 = vld [vmem:[#allocation5 + $0x18] sm:$0xff]  ;;  %v202_v3 = vld [vmem:[#allocation5] sm:$0xff]  ;;  %vm222_vm0 = vcmask 261120   ;;  %v212_v14 = vlaneseq  ;;  %s517_s4 = sshll.u32 %s787_s16, 7 }
  0x56   : > { %713 = vsyncadd (%p1011_p1), [#allocation6], 4294966272  ;;  %290 = vmatprep.mubr.f32.mxu0 %v738_v0  ;;  %v520_v4 = vpack.c.bf16 %v205_v2, %v203_v1  ;;  %v204_v5 = vld [vmem:[#allocation5 + $0x10] sm:$0xff]  ;;  %v207_v6 = vld [vmem:[#allocation5 + $0x28] sm:$0xff]  ;;  %v739_v35 = vmov 683565275   ;;  %s950_s9 = scalar_lea.hbm %s997_s3, %s517_s4 }
  0x57   : > { %v209_v7 = vld [vmem:[#allocation5 + $0x38] sm:$0xff]  ;;  %v522_v8 = vpack.c.bf16 %v204_v5, %v202_v3  ;;  %v206_v10 = vld [vmem:[#allocation5 + $0x20] sm:$0xff]  ;;  %v208_v11 = vld [vmem:[#allocation5 + $0x30] sm:$0xff]  ;;  %v213_v15 = vshrl.u32 %v212_v14, 7  ;;  %v740_v37 = vmov 2475754826  }
  0x58   : > { %v524_v9 = vpack.c.bf16 %v209_v7, %v207_v6  ;;  %521 = vmatprep.subr.bf16.mxu0 %v520_v4  ;;  %v526_v12 = vpack.c.bf16 %v208_v11, %v206_v10  ;;  %v201_v13 = vld [vmem:[%s174_s7] sm:$0xff]  ;;  %v741_v40 = vmov 2131351028   ;;  %v742_v43 = vmov 2102212464   ;;  %s200_s25 = scalar_lea.vmem [#allocation7], %s508_s22 }
  0x59   : > { %523 = vmatpush1.bf16.msra.mxu0 %v522_v8  ;;  %v214_v16 = vsub.s32 0, %v213_v15  ;;  %v210_v17 = vld [vmem:[%s996_s2] sm:$0x3]  ;;  %v218_v18 = vsub.s32 1, %v213_v15  ;;  %v743_v46 = vmov 920167782  }
  0x5a   : > { %525 = vmatprep.subr.bf16.mxu0 %v524_v9  ;;  %v744_v49 = vmov 1326507024   ;;  %s421_s26 = sshll.u32 %s200_s25, 4  ;;  %s408_s16 = scalar_lea.sflag [#allocation4], %s902_s30  ;;  %s952_s26 = int_to_ptr.vmem [resolvable:$true] %s421_s26 }
  0x5b   : > { %v215_v19 = vrot.slane %v210_v17, %v214_v16  ;;  %v219_v20 = vrot.slane %v210_v17, %v218_v18  ;;  %s662_s10 = scalar_lea.vmem %s952_s26, 128  ;;  %s745_s11 = smov [#allocation7]  }
  0x5c   : > { %p663_p4 = scmp.ne.s32.totalorder %s952_s26, %s662_s10  ;;  %s666_s27 = sshll.u32 %s745_s11, 4  ;;  %s667_s27 = int_to_ptr.vmem [resolvable:$false] %s666_s27 }
  0x5d   : > { %527 = vmatpush1.bf16.msra.mxu0 %v526_v12  ;;  %s668_s28 = scalar_lea.vmem %s667_s27, 256  ;;  %p669_p10 = scmp.lt.s32.totalorder %s952_s26, %s667_s27 }
  0x5e   : > { %p664_p6 = pnand %p663_p4, %p857_p12  ;;  %p670_p13 = scmp.lt.s32.totalorder %s668_s28, %s662_s10 }
  0x60   : > { %511 = vmatmul.mubr.msk.f32.vlgmr.msra.gmra.mrb[0].mxu0 %vm222_vm0, %v201_v13  ;;  %p665_p8 = pneg %p664_p6  ;;  %p671_p3 = por %p670_p13, %p669_p10 }
  0x62   : > { %p672_p7 = pnand %p671_p3, %p665_p8 }
 0x133   : > { %v292_v21 = vpop.f32.mrb[0].mxu0 }
 0x134   : > { %v919_v22 = vadd.f32 %v292_v21, %v215_v19  ;;  %v294_v23 = vpop.f32.mrb[1].mxu0 }
 0x135   : > { %v921_v24 = vadd.f32 %v294_v23, %v219_v20 }
 0x136   : > { %v300_v25 = vand.u32 2139095040, %v919_v22  ;;  %v297_v29 = vand.u32 2147483647, %v919_v22  ;;  %vm299_vm8 = vcmp.lt.s32.totalorder %v919_v22, 0  ;;  %vm389_vm13 = vweird.f32 %v919_v22 }
 0x138   : > { %v301_v26 = vshrl.u32 %v300_v25, 23  ;;  %v304_v32 = vand.u32 8388607, %v297_v29  ;;  %vm298_vm9 = vcmp.le.f32.partialorder %v297_v29, 0.7853982 }
 0x13a   : > { %v512_v27 = vadd.s32 4294967169, %v301_v26  ;;  %v305_v51 = vor.u32 8388608, %v304_v32 }
 0x13c   : > { %v307_v28 = vadd.s32 1, %v512_v27  ;;  %v345_v1 = vshll.u32 %v305_v51, 8 }
 0x13e   : > { %vm308_vm1 = vcmp.gt.s32.totalorder %v307_v28, 0 }
 0x13f   : > { %v309_v30 = vsel %vm308_vm1, %v307_v28, 0 }
 0x140   : > { %v311_v31 = vand.u32 31, %v309_v30  ;;  %v310_v34 = vshrl.u32 %v309_v30, 5 }
 0x142   : > { %v312_v33 = vsub.s32 32, %v311_v31  ;;  %v314_v36 = vshll.u32 %v739_v35, %v311_v31  ;;  %v317_v38 = vshll.u32 %v740_v37, %v311_v31  ;;  %v320_v42 = vshll.u32 %v741_v40, %v311_v31 }
 0x143   : > { %v323_v45 = vshll.u32 %v742_v43, %v311_v31  ;;  %v326_v48 = vshll.u32 %v743_v46, %v311_v31  ;;  %vm329_vm2 = vcmp.lt.s32.totalorder %v310_v34, 1  ;;  %vm332_vm3 = vcmp.lt.s32.totalorder %v310_v34, 4 }
 0x144   : > { %v315_v39 = vshrl.u32 %v740_v37, %v312_v33  ;;  %v318_v41 = vshrl.u32 %v741_v40, %v312_v33  ;;  %v321_v44 = vshrl.u32 %v742_v43, %v312_v33  ;;  %v324_v47 = vshrl.u32 %v743_v46, %v312_v33 }
 0x145   : > { %v327_v50 = vshrl.u32 %v744_v49, %v312_v33  ;;  %v313_v60 = vshrl.u32 %v739_v35, %v312_v33  ;;  %vm331_vm4 = vcmp.lt.s32.totalorder %v310_v34, 3  ;;  %vm330_vm5 = vcmp.lt.s32.totalorder %v310_v34, 2 }
 0x146   : > { %v316_v52 = vor.u32 %v315_v39, %v314_v36  ;;  %v319_v53 = vor.u32 %v318_v41, %v317_v38  ;;  %v322_v54 = vor.u32 %v321_v44, %v320_v42  ;;  %v325_v55 = vor.u32 %v324_v47, %v323_v45 }
 0x147   : > { %v328_v56 = vor.u32 %v327_v50, %v326_v48  ;;  %v401_v40 = vmul.f32 %v921_v24, %v921_v24 }
 0x148   : > { %v334_v57 = vsel %vm332_vm3, %v322_v54, 2102212464  ;;  %v337_v58 = vsel %vm329_vm2, %v316_v52, %v319_v53  ;;  %v341_v59 = vsel %vm329_vm2, %v319_v53, %v322_v54  ;;  %v338_v61 = vsel %vm332_vm3, %v325_v55, 920167782 }
 0x149   : > { %v342_v62 = vsel %vm332_vm3, %v328_v56, 1326507024  ;;  %v339_v63 = vsel %vm331_vm4, %v322_v54, %v338_v61  ;;  %v333_v2 = vsel %vm329_vm2, %v313_v60, %v316_v52  ;;  %v335_v3 = vsel %vm331_vm4, %v319_v53, %v334_v57 }
 0x14a   : > { %v343_v0 = vsel %vm331_vm4, %v325_v55, %v342_v62  ;;  %v340_v4 = vsel %vm330_vm5, %v337_v58, %v339_v63  ;;  %v336_v10 = vsel %vm330_vm5, %v333_v2, %v335_v3  ;;  %v402_v44 = vsub.f32 0.0, %v401_v40 }
 0x14b   : > { %v344_v5 = vsel %vm330_vm5, %v341_v59, %v343_v0  ;;  %v930_v8 = vmul.u32.u64.low %v345_v1, %v340_v4  ;;  %v931_v9 = vmul.u32.u64.high %v345_v1, %v340_v4, %v930_v8  ;;  %v352_v12 = vmul.u32 %v345_v1, %v336_v10 }
 0x14c   : > { %v927_v6 = vmul.u32.u64.low %v345_v1, %v344_v5  ;;  %v928_v7 = vmul.u32.u64.high %v345_v1, %v344_v5, %v927_v6  ;;  %v403_v47 = vmul.f32 1.442695, %v402_v44 }
 0x14d   : > { %v355_v11 = vadd.s32 1, %v931_v9 }
 0x14e   : > { %vm354_vm6 = vc.u32 %v928_v7, %v930_v8  ;;  %v353_v26 = vadd.s32 %v930_v8, %v928_v7 }
 0x14f   : > { %v356_v13 = vsel %vm354_vm6, %v355_v11, %v931_v9 }
 0x150   : > { %v357_v14 = vadd.s32 %v356_v13, %v352_v12 }
 0x152   : > { %v358_v15 = vadd.s32 536870912, %v357_v14 }
 0x154   : > { %v359_v16 = vshrl.u32 %v358_v15, 30 }
 0x156   : > { %v360_v17 = vshll.u32 %v359_v16, 30  ;;  %v383_v39 = vsub.s32 4, %v359_v16 }
 0x158   : > { %v361_v18 = vsub.s32 %v357_v14, %v360_v17  ;;  %v384_v43 = vsel %vm299_vm8, %v383_v39, %v359_v16 }
 0x159   : > { %v386_v46 = vsel %vm298_vm9, 0, %v384_v43 }
 0x15a   : > { %v363_v19 = vsub.s32 0, %v361_v18  ;;  %v390_v48 = vadd.s32 3, %v386_v46 }
 0x15c   : > { %v513_v20 = vmin.u32 %v363_v19, %v361_v18  ;;  %v391_v24 = vand.u32 3, %v390_v48 }
 0x15e   : > { %v365_v21 = vclz %v513_v20  ;;  %vm396_vm10 = vcmp.eq.s32.totalorder %v391_v24, 2  ;;  %vm393_vm11 = vcmp.eq.s32.totalorder %v391_v24, 0  ;;  %vm392_vm12 = vcmp.lt.s32.totalorder %v391_v24, 2 }
 0x160   : > { %v514_v23 = vadd.s32 4294967294, %v365_v21 }
 0x162   : > { %vm515_vm7 = vcmp.lt.s32.totalorder %v514_v23, 0 }
 0x163   : > { %v368_v25 = vsel %vm515_vm7, 0, %v514_v23 }
 0x164   : > { %v369_v27 = vsub.s32 32, %v368_v25  ;;  %v373_v28 = vsub.s32 4294967266, %v368_v25  ;;  %v370_v30 = vshll.u32 %v361_v18, %v368_v25 }
 0x166   : > { %v371_v31 = vshrl.u32 %v353_v26, %v369_v27  ;;  %v374_v32 = vadd.s32 127, %v373_v28 }
 0x168   : > { %v372_v33 = vor.u32 %v371_v31, %v370_v30  ;;  %v375_v34 = vshll.u32 %v374_v32, 23 }
 0x16a   : > { %v376_v35 = vor.u32 4788187, %v375_v34  ;;  %v379_v37 = vcvt.s32.f32 %v372_v33 }
 0x16c   : > { %v377_v36 = vand.u32 2147483647, %v376_v35 }
 0x16e   : > { %v380_v38 = vmul.f32 %v379_v37, %v377_v36 }
 0x170   : > { %v381_v41 = vxor.u32 2147483648, %v380_v38 }
 0x172   : > { %v382_v42 = vsel %vm299_vm8, %v381_v41, %v380_v38 }
 0x173   : > { %v385_v45 = vsel %vm298_vm9, %v919_v22, %v382_v42 }
 0x174   : > { %598 = vcosq.f32 %v385_v45 }
 0x175   : > { %600 = vsinq.f32 %v385_v45 }
 0x176   : > { %602 = vpow2.f32 %v403_v47 }
 0x17e   : > { %v599_v49 = vpop.eup %598 }
 0x17f   : > { %v601_v50 = vpop.eup %600  ;;  %v397_v51 = vxor.u32 2147483648, %v599_v49 }
 0x180   : > { %v394_v52 = vxor.u32 2147483648, %v601_v50  ;;  %v603_v55 = vpop.eup %602 }
 0x181   : > { %v398_v29 = vsel %vm396_vm10, %v397_v51, %v601_v50 }
 0x182   : > { %v395_v53 = vsel %vm393_vm11, %v599_v49, %v394_v52 }
 0x183   : > { %v399_v54 = vsel %vm392_vm12, %v395_v53, %v398_v29 }
 0x184   : > { %v400_v56 = vsel %vm389_vm13, nan, %v399_v54 }
 0x185   : > { %v405_v57 = vmul.f32 %v603_v55, %v400_v56 }
 0x187   : > { %406 = vst [vmem:[%s200_s25] sm:$0xff] %v405_v57 }
 0x188   : > { %675 = shalt.err (!%p672_p7)
}
 0x189   : > { %s676_s29 = scalar_lea.hbm %s950_s9, 128  ;;  %s680_s22 = scalar_lea.hbm %s997_s3, 256 }
 0x18a   : > { %p677_p9 = scmp.ne.s32.totalorder %s950_s9, %s676_s29  ;;  %p681_p0 = scmp.lt.u32.totalorder %s950_s9, %s997_s3 }
 0x18b   : > { %p682_p11 = scmp.lt.u32.totalorder %s680_s22, %s676_s29  ;;  %p684_p4 = scmp.lt.u32.totalorder %s676_s29, %s950_s9 }
 0x18c   : > { %p678_p2 = pnand %p677_p9, %p857_p12 }
 0x18d   : > { %p683_p1 = por %p682_p11, %p681_p0 }
 0x18e   : > { %p679_p5 = pneg %p678_p2 }
 0x18f   : > { %p685_p6 = por %p684_p4, %p683_p1 }
 0x191   : > { %p686_p8 = pnand %p685_p6, %p679_p5 }
 0x193   : > { %689 = shalt.err (!%p686_p8)
}
 0x194   : > { %538 = dma.vmem_to_hbm [thread:$0]  (%p857_p12), %s952_s26, 128, %s950_s9, %s408_s16  }
 0x195 PF: > { %s433_s18 = sand.u32 1, %s720_s12   ;;  %p1012_p10 = scmp.ne.s32.totalorder %s1002_s19, 0 }
 0x196   : > { %p1013_p13 = scmp.ge.s32.totalorder %s732_s15, 2  ;;  %s434_s20 = scalar_lea.sflag [#allocation4], %s433_s18 }
 0x198   : > { %p549_p3 = pnand %p1013_p13, %p1012_p10 }
 0x19a   : > { %715 = dma.done.wait (!%p549_p3), %s434_s20, 128  }
 0x19b   : > { %717 = vsyncadd (!%p549_p3), %s434_s20, 4294967168  ;;  %p17_p7 = scmp.ge.s32.totalorder %s822_s24, 4   ;;  %s1014_s12 = smov %s724_s13 }
 0x19c   : > { %s1015_s13 = smov %s728_s14  ;;  %s1016_s14 = smov %s853_s17 }
 0x19d   : > { %s1017_s15 = smov %s822_s24  ;;  %19 = sbr.rel (!%p17_p7) target bundleno = 6 (0x6), region = 81 }
 0x1a4   :  { %439 = vsyncpa [#allocation3], 1 }
 0x1a5   :  { %441 = vsyncpa [#allocation3 + $0x1], 1 }
 0x1a6   :  { %442 = vsyncpa [#allocation6], 1 }
 0x1a7   :  { %443 = vsyncpa [#allocation4], 1 }
 0x1a8   :  { %445 = vsyncpa [#allocation4 + $0x1], 1 }

</bundles_post_ra>
